<compile_context>
chip_gen: v6e
topology: v6e:2x2x1
jax: 0.10.0
libtpu: 0.0.40
codegen_flags: <defaults>
</compile_context>

<pallas_src>
import math

import jax
import jax.numpy as jnp
from jax.experimental import pallas as pl
from jax.experimental.pallas import tpu as pltpu

jax.config.update("jax_default_matmul_precision", "highest")

SIGMA = 25.0
EPS = 1e-3
ALPHA = 0.5

_LANE_TARGET = 8192          # target points (lanes) per grid step
_SEG_BYTES_CAP = 8 << 20     # cap for the in-kernel (TB, L) f32 segment matrix


def _loss_kernel(xT_ref, zT_ref, sc_ref, wA_ref, w2T_ref, b2_ref, out_ref):
    f_dim, lanes = xT_ref.shape            # (F, L) with L = TB * N, points on lanes
    tb = sc_ref.shape[1]
    n = lanes // tb

    xT = xT_ref[...]                       # (F, L)
    zT = zT_ref[...]                       # (F, L)
    sc = sc_ref[...]                       # (4, TB): rows = [std, t, ie, 1]

    # In-kernel one-hot segment matrix: segT[b, l] = 1 iff lane l belongs to
    # batch-column b of this step.  Pure VALU work, no HBM traffic.
    lane = jax.lax.broadcasted_iota(jnp.int32, (tb, lanes), 1)
    start = jax.lax.broadcasted_iota(jnp.int32, (tb, lanes), 0) * n
    segT = ((lane >= start) & (lane < start + n)).astype(jnp.float32)   # (TB, L)

    # Broadcast per-batch scalars onto lanes with one skinny MXU matmul.
    aux = jnp.dot(sc, segT, preferred_element_type=jnp.float32)         # (4, L)
    std_row = aux[0:1, :]

    # attn_padding_mask = (x[:, :, 0] == 0);  mask = ~pad
    mask_row = (xT[0:1, :] != 0.0).astype(jnp.float32)                  # (1, L)
    z_m = zT * mask_row
    pert = (xT + std_row * z_m) * mask_row                              # (F, L)

    # Score model: conditioning + bias folded into one K = F + 4 = 8 matmul.
    first_in = jnp.concatenate([pert, aux], axis=0)                     # (8, L)
    h = jnp.tanh(jnp.dot(wA_ref[...], first_in,
                         preferred_element_type=jnp.float32))           # (H, L)
    scores = (jnp.dot(w2T_ref[...], h, preferred_element_type=jnp.float32)
              + b2_ref[...])                                            # (F, L)

    # ---- per-batch statistics via Gram contractions against segT -------------
    dn = (((1,), (1,)), ((), ()))          # contract the lane axis of both sides
    inv_n = jnp.float32(1.0 / n)
    inv_nm1 = jnp.float32(1.0 / max(n - 1, 1))     # torch.std is unbiased

    # pass 1: per-batch channel means, broadcast back to lanes (exact one-hot)
    s_sum = jax.lax.dot_general(scores, segT, dn,
                                preferred_element_type=jnp.float32)     # (F, TB)
    mean_l = jnp.dot(s_sum * inv_n, segT,
                     preferred_element_type=jnp.float32)                # (F, L)
    cent = scores - mean_l                                              # two-pass centering
    th_c = cent[2:3, :]

    # pass 2: one fused 12-row Gram for loss + variances + covariances
    resid = scores * std_row + z_m
    stacked = jnp.concatenate([resid * resid, cent * cent, cent * th_c], axis=0)
    stats = jax.lax.dot_general(stacked, segT, dn,
                                preferred_element_type=jnp.float32)     # (12, TB)

    loss_b = (jnp.sum(stats[0:4, :], axis=0, keepdims=True)
              * jnp.float32(1.0 / (n * f_dim)))                         # (1, TB)
    stdv = jnp.sqrt(stats[4:8, :] * inv_nm1)                            # (F, TB)
    corr = (stats[8:12, :] * inv_n) / (stdv * stdv[2:3, :] + 1e-8)      # e,r,th,z vs theta

    # Single lane-dense (8, TB) output slab: [loss, corr_et, corr_rt, corr_zt, 0..]
    out_ref[...] = jnp.concatenate(
        [loss_b, corr[0:2, :], corr[3:4, :],
         jnp.zeros((4, tb), jnp.float32)], axis=0)


def _pick_tb(batch, n_points):
    """Batch elements per grid step.

    Keeps the per-step lane extent a multiple of 128 whenever the batch is
    tiled, caps it at _LANE_TARGET, and caps the in-kernel (TB, TB*N) segment
    matrix (a VMEM transient quadratic in TB) at _SEG_BYTES_CAP.
    """
    if (batch * n_points <= _LANE_TARGET
            and 4 * n_points * batch * batch <= _SEG_BYTES_CAP):
        return batch
    tb = max(1, 128 // math.gcd(n_points, 128))
    while (tb * 2 <= batch
           and tb * 2 * n_points <= _LANE_TARGET
           and 4 * n_points * (tb * 2) ** 2 <= _SEG_BYTES_CAP):
        tb *= 2
    return min(tb, batch)


def score_matching_loss(x, incident_energies, random_t, std_, z, params, alpha=ALPHA):
    """Returns (total_loss, batch_loss, correlation_penalty_et) like the torch module."""
    B, N, Fdim = x.shape
    H = params["w1"].shape[1]

    t1 = random_t.reshape(B).astype(jnp.float32)
    ie1 = incident_energies.reshape(B).astype(jnp.float32)
    s1 = std_.reshape(B).astype(jnp.float32)

    TB = _pick_tb(B, N)
    steps = (B + TB - 1) // TB
    B_pad = steps * TB
    if B_pad != B:
        pad = B_pad - B
        x = jnp.pad(x, ((0, pad), (0, 0), (0, 0)))
        z = jnp.pad(z, ((0, pad), (0, 0), (0, 0)))
        t1 = jnp.pad(t1, (0, pad))
        ie1 = jnp.pad(ie1, (0, pad))
        s1 = jnp.pad(s1, (0, pad))

    L = TB * N
    LT = B_pad * N

    # Lane-dense, channel-major layouts: points on the 128-lane axis.
    # TODO(synk): producer should emit channel-major x/z to avoid this HBM round trip.
    xT = jnp.transpose(x.astype(jnp.float32), (2, 0, 1)).reshape(Fdim, LT)
    zT = jnp.transpose(z.astype(jnp.float32), (2, 0, 1)).reshape(Fdim, LT)

    # Only per-batch conditioning scalars go to HBM; lane expansion is in-kernel.
    sc = jnp.stack([s1, t1, ie1, jnp.ones((B_pad,), jnp.float32)], axis=0)  # (4, B_pad)
    sc = sc.reshape(4, steps, TB).transpose(1, 0, 2)                        # (steps, 4, TB)

    # First-layer weights with conditioning folded in:
    # columns = [w1 per-channel | 0 (std row) | t | ie | bias].
    wAug = jnp.concatenate([
        params["w1"].T.astype(jnp.float32),
        jnp.zeros((H, 1), jnp.float32),
        params["cond"][1][:, None].astype(jnp.float32),
        params["cond"][2][:, None].astype(jnp.float32),
        params["cond"][0][:, None].astype(jnp.float32),
    ], axis=1)                                                              # (H, 8)
    w2T = params["w2"].T.astype(jnp.float32)                                # (F, H)
    b2c = params["b2"].reshape(Fdim, 1).astype(jnp.float32)                 # (F, 1)

    out = pl.pallas_call(
        _loss_kernel,
        out_shape=jax.ShapeDtypeStruct((steps, 8, TB), jnp.float32),
        grid=(steps,),
        in_specs=[
            pl.BlockSpec((Fdim, L), lambda i: (0, i)),          # x^T
            pl.BlockSpec((Fdim, L), lambda i: (0, i)),          # z^T
            pl.BlockSpec((None, 4, TB), lambda i: (i, 0, 0)),   # per-batch scalars
            pl.BlockSpec((H, Fdim + 4), lambda i: (0, 0)),      # fused first layer
            pl.BlockSpec((Fdim, H), lambda i: (0, 0)),          # w2^T
            pl.BlockSpec((Fdim, 1), lambda i: (0, 0)),          # b2
        ],
        out_specs=pl.BlockSpec((None, 8, TB), lambda i: (i, 0, 0)),
        compiler_params=pltpu.CompilerParams(
            dimension_semantics=("parallel",),
            vmem_limit_bytes=32 * 1024 * 1024),
    )(xT, zT, sc, wAug, w2T, b2c)

    losses = out[:, 0, :].reshape(B_pad)[:B]
    cet = out[:, 1, :].reshape(B_pad)[:B]
    crt = out[:, 2, :].reshape(B_pad)[:B]
    czt = out[:, 3, :].reshape(B_pad)[:B]

    batch_loss = jnp.mean(losses)
    pen_et = jnp.mean(cet ** 2)
    pen_rt = jnp.mean(crt ** 2)
    pen_zt = jnp.mean(czt ** 2)
    total = batch_loss + alpha * pen_et + alpha * pen_rt + alpha * pen_zt
    return total, batch_loss, pen_et


def _reference(x, ie, t, std, z, params, alpha=ALPHA):
    """Pure-JAX mirror of the torch forward pass for a correctness check."""
    mask = (x[:, :, 0] != 0.0).astype(jnp.float32)[..., None]
    z_m = z * mask
    pert = (x + std[:, None, None] * z_m) * mask
    h = jnp.einsum("bnf,fh->bnh", pert, params["w1"])
    h = jnp.tanh(h + params["cond"][0][None, None, :]
                 + t[:, None, None] * params["cond"][1][None, None, :]
                 + ie[:, None, None] * params["cond"][2][None, None, :])
    scores = jnp.einsum("bnh,hf->bnf", h, params["w2"]) + params["b2"][0][None, None, :]
    losses = jnp.mean((scores * std[:, None, None] + z_m) ** 2, axis=(1, 2))
    batch_loss = jnp.mean(losses)

    n = x.shape[1]
    def centered(i):
        c = scores[:, :, i]
        return c - jnp.mean(c, axis=1, keepdims=True)
    e_c, r_c, th_c, zz_c = centered(0), centered(1), centered(2), centered(3)
    stdv = lambda c: jnp.sqrt(jnp.sum(c * c, axis=1) / (n - 1))
    cet = jnp.mean(e_c * th_c, axis=1) / (stdv(e_c) * stdv(th_c) + 1e-8)
    crt = jnp.mean(r_c * th_c, axis=1) / (stdv(r_c) * stdv(th_c) + 1e-8)
    czt = jnp.mean(zz_c * th_c, axis=1) / (stdv(zz_c) * stdv(th_c) + 1e-8)
    pen_et, pen_rt, pen_zt = jnp.mean(cet ** 2), jnp.mean(crt ** 2), jnp.mean(czt ** 2)
    total = batch_loss + alpha * (pen_et + pen_rt + pen_zt)
    return total, batch_loss, pen_et


if __name__ == "__main__":
    B, N, F, H = 2, 16, 4, 32

    key = jax.random.PRNGKey(0)
    k = jax.random.split(key, 8)

    x = jax.random.normal(k[0], (B, N, F), jnp.float32)
    # simulate padded points (padding <=> x[:, :, 0] == 0): zero out trailing rows
    valid = (jnp.arange(N) < 12)[None, :, None].astype(jnp.float32)
    x = x * valid

    incident_energies = jax.random.uniform(k[1], (B,), jnp.float32, 0.5, 2.0)

    # random_t = rand(B) * (1 - eps) + eps   (torch RNG replaced by JAX RNG)
    random_t = jax.random.uniform(k[2], (B,), jnp.float32) * (1.0 - EPS) + EPS
    # z ~ Normal(0, 1) with x's shape
    z = jax.random.normal(k[3], (B, N, F), jnp.float32)

    # marginal_prob_std callable (VE SDE, sigma=25), evaluated outside the kernel
    # exactly like the torch module receives it as a function argument.
    std_ = jnp.sqrt((SIGMA ** (2.0 * random_t) - 1.0) / (2.0 * jnp.log(SIGMA)))

    # deterministic synthetic score-model parameters
    params = {
        "w1": jax.random.normal(k[4], (F, H), jnp.float32) * 0.3,
        "cond": jax.random.normal(k[5], (3, H), jnp.float32) * 0.3,
        "w2": jax.random.normal(k[6], (H, F), jnp.float32) * 0.3,
        "b2": jax.random.normal(k[7], (1, F), jnp.float32) * 0.1,
    }

    out = score_matching_loss(x, incident_energies, random_t, std_, z, params)
    out = jax.block_until_ready(out)

    ref = _reference(x, incident_energies, random_t, std_, z, params)
    # tolerance covers MXU rounding in the in-kernel matmuls vs the JAX reference
    for a, b in zip(out, ref):
        assert jnp.allclose(a, b, atol=2e-3, rtol=2e-3), (a, b)

    print("KERNEL_OK")
</pallas_src>

<mosaic_0001>
module attributes {stable_mosaic.version = 11 : i64} {
  func.func @_loss_kernel(%arg0: i32, %arg1: memref<4x32xf32, #tpu.memory_space<vmem>>, %arg2: memref<4x32xf32, #tpu.memory_space<vmem>>, %arg3: memref<1x4x2xf32, #tpu.memory_space<vmem>>, %arg4: memref<32x8xf32, #tpu.memory_space<vmem>>, %arg5: memref<4x32xf32, #tpu.memory_space<vmem>>, %arg6: memref<4x1xf32, #tpu.memory_space<vmem>>, %arg7: memref<1x8x2xf32, #tpu.memory_space<vmem>>) attributes {dimension_semantics = [#tpu.dimension_semantics<parallel>], iteration_bounds = array<i64: 1>, scalar_prefetch = 0 : i64, scratch_operands = 0 : i64, tpu.core_type = #tpu.core_type<tc>, window_params = [{transform_indices = @transform_0, window_bounds = array<i64: 4, 32>}, {transform_indices = @transform_1, window_bounds = array<i64: 4, 32>}, {transform_indices = @transform_2, window_bounds = array<i64: 1, 4, 2>}, {pipeline_mode = #tpu.pipeline_mode<synchronous>, transform_indices = @transform_3, window_bounds = array<i64: 32, 8>}, {pipeline_mode = #tpu.pipeline_mode<synchronous>, transform_indices = @transform_4, window_bounds = array<i64: 4, 32>}, {pipeline_mode = #tpu.pipeline_mode<synchronous>, transform_indices = @transform_5, window_bounds = array<i64: 4, 1>}, {transform_indices = @transform_6, window_bounds = array<i64: 1, 8, 2>}]} {
    %c0 = arith.constant 0 : index
    %c0_0 = arith.constant 0 : index
    %0 = vector.load %arg1[%c0, %c0_0] : memref<4x32xf32, #tpu.memory_space<vmem>>, vector<4x32xf32>
    %c0_1 = arith.constant 0 : index
    %c0_2 = arith.constant 0 : index
    %1 = vector.load %arg2[%c0_1, %c0_2] : memref<4x32xf32, #tpu.memory_space<vmem>>, vector<4x32xf32>
    %c0_3 = arith.constant 0 : index
    %c0_4 = arith.constant 0 : index
    %c0_5 = arith.constant 0 : index
    %2 = vector.load %arg3[%c0_3, %c0_4, %c0_5] : memref<1x4x2xf32, #tpu.memory_space<vmem>>, vector<1x4x2xf32>
    %3 = vector.shape_cast %2 : vector<1x4x2xf32> to vector<4x2xf32>
    %4 = tpu.iota {dimensions = array<i32: 1>} : vector<2x32xi32>
    %5 = tpu.iota {dimensions = array<i32: 0>} : vector<2x32xi32>
    %c16_i32 = arith.constant 16 : i32
    %6 = vector.broadcast %c16_i32 : i32 to vector<2x32xi32>
    %7 = arith.muli %5, %6 : vector<2x32xi32>
    %8 = arith.cmpi sge, %4, %7 : vector<2x32xi32>
    %c16_i32_6 = arith.constant 16 : i32
    %9 = vector.broadcast %c16_i32_6 : i32 to vector<2x32xi32>
    %10 = arith.addi %7, %9 : vector<2x32xi32>
    %11 = arith.cmpi slt, %4, %10 : vector<2x32xi32>
    %12 = arith.andi %8, %11 : vector<2x32xi1>
    %13 = arith.extui %12 : vector<2x32xi1> to vector<2x32xi32>
    %14 = arith.sitofp %13 : vector<2x32xi32> to vector<2x32xf32>
    %cst = arith.constant dense<0.000000e+00> : vector<4x32xf32>
    %15 = tpu.matmul %3, %14, %cst {dimension_numbers = #tpu.dot_dimension_numbers<[1], [0], [0], [1], [0, 0, 1, 1], [], []>, precision = #tpu.contract_precision<fp32>} : vector<4x2xf32>, vector<2x32xf32>, vector<4x32xf32> -> vector<4x32xf32>
    %16 = vector.extract_strided_slice %15 {offsets = [0, 0], sizes = [1, 32], strides = [1, 1]} : vector<4x32xf32> to vector<1x32xf32>
    %17 = vector.extract_strided_slice %0 {offsets = [0, 0], sizes = [1, 32], strides = [1, 1]} : vector<4x32xf32> to vector<1x32xf32>
    %cst_7 = arith.constant 0.000000e+00 : f32
    %18 = vector.broadcast %cst_7 : f32 to vector<1x32xf32>
    %19 = arith.cmpf one, %17, %18 : vector<1x32xf32>
    %20 = arith.extui %19 : vector<1x32xi1> to vector<1x32xi32>
    %21 = arith.sitofp %20 : vector<1x32xi32> to vector<1x32xf32>
    %22 = vector.broadcast %21 : vector<1x32xf32> to vector<4x32xf32>
    %23 = arith.mulf %1, %22 : vector<4x32xf32>
    %24 = vector.broadcast %16 : vector<1x32xf32> to vector<4x32xf32>
    %25 = arith.mulf %24, %23 : vector<4x32xf32>
    %26 = arith.addf %0, %25 : vector<4x32xf32>
    %27 = vector.broadcast %21 : vector<1x32xf32> to vector<4x32xf32>
    %28 = arith.mulf %26, %27 : vector<4x32xf32>
    %29 = tpu.concatenate %28, %15 in 0 : vector<4x32xf32>, vector<4x32xf32> -> vector<8x32xf32>
    %c0_8 = arith.constant 0 : index
    %c0_9 = arith.constant 0 : index
    %30 = vector.load %arg4[%c0_8, %c0_9] : memref<32x8xf32, #tpu.memory_space<vmem>>, vector<32x8xf32>
    %cst_10 = arith.constant dense<0.000000e+00> : vector<32x32xf32>
    %31 = tpu.matmul %30, %29, %cst_10 {dimension_numbers = #tpu.dot_dimension_numbers<[1], [0], [0], [1], [0, 0, 1, 1], [], []>, precision = #tpu.contract_precision<fp32>} : vector<32x8xf32>, vector<8x32xf32>, vector<32x32xf32> -> vector<32x32xf32>
    %32 = math.tanh %31 : vector<32x32xf32>
    %c0_11 = arith.constant 0 : index
    %c0_12 = arith.constant 0 : index
    %33 = vector.load %arg5[%c0_11, %c0_12] : memref<4x32xf32, #tpu.memory_space<vmem>>, vector<4x32xf32>
    %cst_13 = arith.constant dense<0.000000e+00> : vector<4x32xf32>
    %34 = tpu.matmul %33, %32, %cst_13 {dimension_numbers = #tpu.dot_dimension_numbers<[1], [0], [0], [1], [0, 0, 1, 1], [], []>, precision = #tpu.contract_precision<fp32>} : vector<4x32xf32>, vector<32x32xf32>, vector<4x32xf32> -> vector<4x32xf32>
    %c0_14 = arith.constant 0 : index
    %c0_15 = arith.constant 0 : index
    %35 = vector.load %arg6[%c0_14, %c0_15] : memref<4x1xf32, #tpu.memory_space<vmem>>, vector<4x1xf32>
    %36 = vector.broadcast %35 : vector<4x1xf32> to vector<4x32xf32>
    %37 = arith.addf %34, %36 : vector<4x32xf32>
    %cst_16 = arith.constant dense<0.000000e+00> : vector<4x2xf32>
    %38 = tpu.matmul %37, %14, %cst_16 {dimension_numbers = #tpu.dot_dimension_numbers<[1], [1], [0], [0], [0, 0, 1, 0], [], []>, precision = #tpu.contract_precision<fp32>} : vector<4x32xf32>, vector<2x32xf32>, vector<4x2xf32> -> vector<4x2xf32>
    %cst_17 = arith.constant 6.250000e-02 : f32
    %39 = vector.broadcast %cst_17 : f32 to vector<4x2xf32>
    %40 = arith.mulf %38, %39 : vector<4x2xf32>
    %cst_18 = arith.constant dense<0.000000e+00> : vector<4x32xf32>
    %41 = tpu.matmul %40, %14, %cst_18 {dimension_numbers = #tpu.dot_dimension_numbers<[1], [0], [0], [1], [0, 0, 1, 1], [], []>, precision = #tpu.contract_precision<fp32>} : vector<4x2xf32>, vector<2x32xf32>, vector<4x32xf32> -> vector<4x32xf32>
    %42 = arith.subf %37, %41 : vector<4x32xf32>
    %43 = vector.extract_strided_slice %42 {offsets = [2, 0], sizes = [1, 32], strides = [1, 1]} : vector<4x32xf32> to vector<1x32xf32>
    %44 = vector.broadcast %16 : vector<1x32xf32> to vector<4x32xf32>
    %45 = arith.mulf %37, %44 : vector<4x32xf32>
    %46 = arith.addf %45, %23 : vector<4x32xf32>
    %47 = arith.mulf %46, %46 : vector<4x32xf32>
    %48 = arith.mulf %42, %42 : vector<4x32xf32>
    %49 = vector.broadcast %43 : vector<1x32xf32> to vector<4x32xf32>
    %50 = arith.mulf %42, %49 : vector<4x32xf32>
    %51 = tpu.concatenate %47, %48, %50 in 0 : vector<4x32xf32>, vector<4x32xf32>, vector<4x32xf32> -> vector<12x32xf32>
    %cst_19 = arith.constant dense<0.000000e+00> : vector<12x2xf32>
    %52 = tpu.matmul %51, %14, %cst_19 {dimension_numbers = #tpu.dot_dimension_numbers<[1], [1], [0], [0], [0, 0, 1, 0], [], []>, precision = #tpu.contract_precision<fp32>} : vector<12x32xf32>, vector<2x32xf32>, vector<12x2xf32> -> vector<12x2xf32>
    %53 = vector.extract_strided_slice %52 {offsets = [0, 0], sizes = [4, 2], strides = [1, 1]} : vector<12x2xf32> to vector<4x2xf32>
    %cst_20 = arith.constant dense<0.000000e+00> : vector<2xf32>
    %54 = vector.multi_reduction <add>, %53, %cst_20 [0] : vector<4x2xf32> to vector<2xf32>
    %55 = vector.shape_cast %54 : vector<2xf32> to vector<1x2xf32>
    %cst_21 = arith.constant 1.562500e-02 : f32
    %56 = vector.broadcast %cst_21 : f32 to vector<1x2xf32>
    %57 = arith.mulf %55, %56 : vector<1x2xf32>
    %58 = vector.extract_strided_slice %52 {offsets = [4, 0], sizes = [4, 2], strides = [1, 1]} : vector<12x2xf32> to vector<4x2xf32>
    %cst_22 = arith.constant 0.0666666701 : f32
    %59 = vector.broadcast %cst_22 : f32 to vector<4x2xf32>
    %60 = arith.mulf %58, %59 : vector<4x2xf32>
    %61 = math.sqrt %60 : vector<4x2xf32>
    %62 = vector.extract_strided_slice %52 {offsets = [8, 0], sizes = [4, 2], strides = [1, 1]} : vector<12x2xf32> to vector<4x2xf32>
    %cst_23 = arith.constant 6.250000e-02 : f32
    %63 = vector.broadcast %cst_23 : f32 to vector<4x2xf32>
    %64 = arith.mulf %62, %63 : vector<4x2xf32>
    %65 = vector.extract_strided_slice %61 {offsets = [2, 0], sizes = [1, 2], strides = [1, 1]} : vector<4x2xf32> to vector<1x2xf32>
    %66 = vector.broadcast %65 : vector<1x2xf32> to vector<4x2xf32>
    %67 = arith.mulf %61, %66 : vector<4x2xf32>
    %cst_24 = arith.constant 9.99999993E-9 : f32
    %68 = vector.broadcast %cst_24 : f32 to vector<4x2xf32>
    %69 = arith.addf %67, %68 : vector<4x2xf32>
    %70 = arith.divf %64, %69 : vector<4x2xf32>
    %71 = vector.extract_strided_slice %70 {offsets = [0, 0], sizes = [2, 2], strides = [1, 1]} : vector<4x2xf32> to vector<2x2xf32>
    %72 = vector.extract_strided_slice %70 {offsets = [3, 0], sizes = [1, 2], strides = [1, 1]} : vector<4x2xf32> to vector<1x2xf32>
    %cst_25 = arith.constant 0.000000e+00 : f32
    %73 = vector.broadcast %cst_25 : f32 to vector<4x2xf32>
    %74 = tpu.concatenate %57, %71, %72, %73 in 0 : vector<1x2xf32>, vector<2x2xf32>, vector<1x2xf32>, vector<4x2xf32> -> vector<8x2xf32>
    %c0_26 = arith.constant 0 : index
    %c0_27 = arith.constant 0 : index
    %c0_28 = arith.constant 0 : index
    %75 = vector.load %arg7[%c0_26, %c0_27, %c0_28] : memref<1x8x2xf32, #tpu.memory_space<vmem>>, vector<1x8x2xf32>
    %76 = vector.shape_cast %75 : vector<1x8x2xf32> to vector<8x2xf32>
    %77 = vector.shape_cast %74 : vector<8x2xf32> to vector<1x8x2xf32>
    tpu.vector_store %arg7[%c0_26, %c0_27, %c0_28], %77 {strides = array<i32>} : memref<1x8x2xf32, #tpu.memory_space<vmem>>, vector<1x8x2xf32>,
    return
  }
  func.func @transform_0(%arg0: i32) -> (i32, i32) {
    %c0_i32 = arith.constant 0 : i32
    %c0_i32_0 = arith.constant 0 : i32
    return %c0_i32, %arg0 : i32, i32
  }
  func.func @transform_1(%arg0: i32) -> (i32, i32) {
    %c0_i32 = arith.constant 0 : i32
    %c0_i32_0 = arith.constant 0 : i32
    return %c0_i32, %arg0 : i32, i32
  }
  func.func @transform_2(%arg0: i32) -> (i32, i32, i32) {
    %c0_i32 = arith.constant 0 : i32
    %c0_i32_0 = arith.constant 0 : i32
    %c0_i32_1 = arith.constant 0 : i32
    return %arg0, %c0_i32, %c0_i32_0 : i32, i32, i32
  }
  func.func @transform_3(%arg0: i32) -> (i32, i32) {
    %c0_i32 = arith.constant 0 : i32
    %c0_i32_0 = arith.constant 0 : i32
    %c0_i32_1 = arith.constant 0 : i32
    return %c0_i32, %c0_i32_0 : i32, i32
  }
  func.func @transform_4(%arg0: i32) -> (i32, i32) {
    %c0_i32 = arith.constant 0 : i32
    %c0_i32_0 = arith.constant 0 : i32
    %c0_i32_1 = arith.constant 0 : i32
    return %c0_i32, %c0_i32_0 : i32, i32
  }
  func.func @transform_5(%arg0: i32) -> (i32, i32) {
    %c0_i32 = arith.constant 0 : i32
    %c0_i32_0 = arith.constant 0 : i32
    %c0_i32_1 = arith.constant 0 : i32
    return %c0_i32, %c0_i32_0 : i32, i32
  }
  func.func @transform_6(%arg0: i32) -> (i32, i32, i32) {
    %c0_i32 = arith.constant 0 : i32
    %c0_i32_0 = arith.constant 0 : i32
    %c0_i32_1 = arith.constant 0 : i32
    return %arg0, %c0_i32, %c0_i32_0 : i32, i32, i32
  }
}

</mosaic_0001>

<bundles_post_ra>
// kernel: tpu_custom_call.1
= control target key start
LH: loop header
LB: loop body
LE: loop exit
PB: predicated region body
PF: predicated region fallthrough
CT: control target
= control target key end

     0   :  { %v26_v0 = vlaneseq  ;;  %v3433_v1 = vmov 0.0   ;;  %vm3434_vm0 = vmmov 0   ;;  %vm37_vm1 = vcmask 15360   ;;  %s3757_s2 = inlined_call_operand.vmem [shape: f32[1,4,2], index: 2, kind: input, shape index: {}]   ;;  %s3758_s3 = inlined_call_operand.vmem [shape: f32[32,8], index: 3, kind: input, shape index: {}]   ;;  %s3759_s0 = inlined_call_operand.vmem [shape: f32[4,32], index: 0, kind: input, shape index: {}]   ;;  %s3760_s1 = inlined_call_operand.vmem [shape: f32[4,32], index: 1, kind: input, shape index: {}]   ;;  %s3761_s5 = inlined_call_operand.vmem [shape: f32[4,1], index: 5, kind: input, shape index: {}]   ;;  %s3762_s4 = inlined_call_operand.vmem [shape: f32[4,32], index: 4, kind: input, shape index: {}]   ;;  %s3763_s6 = inlined_call_operand.vmem [shape: f32[1,8,2], index: 6, kind: output, shape index: {}]  }
   0x1   :  { %3183 = vmatprep.subr.mxu0 %v3433_v1  ;;  %3185 = vmatprep.mubr.msk.f32.mxu0 %vm3434_vm0, %v3433_v1  ;;  %v25_v2 = vld [vmem:[%s3757_s2] sm:$0xf]  ;;  %vm41_vm4 = vcmask 1041408   ;;  %vm515_vm6 = vcmask 64512   ;;  %v512_v21 = vld [vmem:[%s3758_s3 + $0x8] sm:$0xff]  ;;  %v513_v25 = vld [vmem:[%s3758_s3 + $0x10] sm:$0xff] }
   0x2   :  { %v27_v3 = vand.u32 127, %v26_v0  ;;  %v3477_v4 = vshrl.u32 %v26_v0, 7  ;;  %v39_v5 = vsel %vm37_vm1, %v25_v2, 0  ;;  %3188 = vmatprep.subr.mxu1 %v3433_v1  ;;  %3190 = vmatprep.mubr.msk.f32.mxu1 %vm3434_vm0, %v3433_v1  ;;  %v511_v19 = vld [vmem:[%s3758_s3] sm:$0xff]  ;;  %v520_v23 = vsel %vm515_vm6, %v512_v21, 0  ;;  %v514_v27 = vld [vmem:[%s3758_s3 + $0x18] sm:$0xff] }
   0x3   :  { %v111_v6 = vand.u32 4294901760, %v39_v5  ;;  %v517_v20 = vsel %vm515_vm6, %v511_v19, 0  ;;  %v523_v26 = vsel %vm515_vm6, %v513_v25, 0  ;;  %v526_v29 = vsel %vm515_vm6, %v514_v27, 0  ;;  %v23_v35 = vld [vmem:[%s3759_s0] sm:$0xf] }
   0x4   :  { %v30_v7 = vmul.u32 16, %v3477_v4  ;;  %v3525_v22 = vand.u32 4294901760, %v517_v20  ;;  %vm491_vm7 = vcmp.ne.f32.partialorder %v23_v35, 0.0  ;;  %v496_v39 = vsub.s32 0, %v3477_v4  ;;  %v24_v51 = vld [vmem:[%s3760_s1] sm:$0xf] }
   0x5   :  { %v112_v8 = vsub.f32 %v39_v5, %v111_v6  ;;  %v3059_v42 = vsel %vm491_vm7, 1.0, %v3433_v1  ;;  %v3546_v46 = vand.u32 4294901760, %v520_v23  ;;  %v3548_v49 = vand.u32 4294901760, %v523_v26  ;;  %v1108_v25 = vld [vmem:[%s3761_s5] sm:$0xf] }
   0x6   :  { %vm31_vm2 = vcmp.ge.s32.totalorder %v27_v3, %v30_v7  ;;  %v32_v9 = vadd.s32 16, %v30_v7  ;;  %v3528_v24 = vsub.f32 %v517_v20, %v3525_v22  ;;  %v497_v48 = vrot.slane %v3059_v42, %v496_v39 }
   0x7   :  { %v113_v10 = vand.u32 4294901760, %v112_v8  ;;  %v605_v54 = vsub.f32 %v520_v23, %v3546_v46  ;;  %v624_v55 = vand.u32 4294901760, %v526_v29  ;;  %v615_v58 = vsub.f32 %v523_v26, %v3548_v49 }
   0x8   :  { %vm33_vm3 = vcmp.lt.s32.totalorder %v27_v3, %v32_v9  ;;  %v596_v28 = vand.u32 4294901760, %v3528_v24  ;;  %v3554_v57 = vmul.f32 %v497_v48, %v24_v51  ;;  %vm509_vm8 = vcmask 1043456  }
   0x9   :  { %vm34_vm5 = vmand %vm31_vm2, %vm33_vm3  ;;  %v114_v11 = vsub.f32 %v112_v8, %v113_v10  ;;  %v606_v61 = vand.u32 4294901760, %v605_v54  ;;  %v625_v62 = vsub.f32 %v526_v29, %v624_v55  ;;  %v616_v0 = vand.u32 4294901760, %v615_v58 }
   0xa   :  { %v3485_v12 = vsel %vm34_vm5, 1.0, %v3433_v1  ;;  %v597_v30 = vsub.f32 %v3528_v24, %v596_v28  ;;  %vm1114_vm9 = vcmask 261120   ;;  %vm3013_vm10 = vcmask 11264  }
   0xb   :  { %3184 = vmatpush3.msk.msra.mxu0 %vm41_vm4, %v3485_v12  ;;  %v115_v13 = vand.u32 4294901760, %v114_v11  ;;  %v43_v14 = vsel %vm41_vm4, %v3485_v12, 0  ;;  %v607_v3 = vsub.f32 %v605_v54, %v606_v61  ;;  %v626_v5 = vand.u32 4294901760, %v625_v62 }
   0xc   :  { %3193 = vmatprep.subr.mxu0 %v3433_v1  ;;  %v3492_v15 = vsub.f32 %v43_v14, %v43_v14  ;;  %v598_v31 = vand.u32 4294901760, %v597_v30  ;;  %vm3045_vm13 = vcmask 1040384   ;;  %vm3047_vm14 = vcmask 1042432  }
   0xd   :  { %3186 = vmatmul.mubr.f32.vlgmr.msra.gmra.mxu0 %v115_v13  ;;  %v608_v11 = vand.u32 4294901760, %v607_v3  ;;  %v627_v13 = vsub.f32 %v625_v62, %v626_v5 }
   0xe   :  { %v3495_v16 = vand.u32 4294901760, %v3492_v15  ;;  %3194 = vmatpush3.msra.mxu0 %v3492_v15  ;;  %3195 = vmatprep.mubr.msk.f32.mxu0 %vm3434_vm0, %v3433_v1 }
   0xf   :  { %3203 = vmatprep.subr.mxu0 %v3433_v1  ;;  %v628_v20 = vand.u32 4294901760, %v627_v13 }
  0x10   :  { %v155_v17 = vsub.f32 %v3492_v15, %v3495_v16 }
  0x11   :  { %3196 = vmatmul.mubr.f32.vlgmr.msra.gmra.mxu0 %v112_v8  ;;  %v617_v8 = vsub.f32 %v615_v58, %v616_v0 }
  0x12   :  { %v3503_v18 = vand.u32 4294901760, %v155_v17  ;;  %3204 = vmatpush3.msra.mxu0 %v3495_v16  ;;  %3205 = vmatprep.mubr.msk.f32.mxu0 %vm3434_vm0, %v3433_v1 }
  0x13   :  { %v618_v14 = vand.u32 4294901760, %v617_v8 }
  0x14   :  { %3189 = vmatpush3.msra.mxu1 %v3503_v18 }
  0x15   :  { %3191 = vmatmul.mubr.f32.vlgmr.msra.gmra.mxu1 %v111_v6  ;;  %3198 = vmatprep.subr.mxu1 %v3433_v1 }
  0x16   :  { %3199 = vmatpush3.msk.msra.mxu1 %vm41_vm4, %v3485_v12  ;;  %3200 = vmatprep.mubr.msk.f32.mxu1 %vm3434_vm0, %v3433_v1 }
  0x17   :  { %3206 = vmatmul.mubr.f32.vlgmr.msra.gmra.mxu0 %v111_v6  ;;  %3208 = vmatprep.subr.mxu1 %v3433_v1 }
  0x18   :  { %3215 = vmatprep.mubr.f32.mxu0 %v598_v31 }
  0x19   :  { %3201 = vmatmul.mubr.f32.vlgmr.msra.gmra.mxu1 %v113_v10 }
  0x1a   :  { %3209 = vmatpush3.msk.msra.mxu1 %vm41_vm4, %v3485_v12  ;;  %3210 = vmatprep.mubr.msk.f32.mxu1 %vm3434_vm0, %v3433_v1 }
  0x1d   :  { %3211 = vmatmul.mubr.f32.vlgmr.msra.gmra.mxu1 %v111_v6 }
  0x1e   :  { %3223 = vmatprep.mubr.f32.mxu1 %v3525_v22 }
  0xcd   :  { %v117_v32 = vpop.f32.mrf.mxu0 }
  0xcf   :  { %v3187_v33 = vpop.f32.mrf.mxu0 }
  0xd1   :  { %v267_v34 = vpop.f32.mrf.mxu0 }
  0xd3   :  { %v3197_v36 = vpop.f32.mrf.mxu0 }
  0xd5   :  { %v193_v37 = vpop.f32.mrf.mxu1 }
  0xd6   :  { %v194_v38 = vadd.f32 %v193_v37, %v117_v32 }
  0xd7   :  { %v3192_v40 = vpop.f32.mrf.mxu1  ;;  %v415_v41 = vpop.f32.mrf.mxu0 }
  0xd8   :  { %v268_v43 = vadd.f32 %v267_v34, %v194_v38 }
  0xd9   :  { %v341_v44 = vpop.f32.mrf.mxu1  ;;  %v3207_v45 = vpop.f32.mrf.mxu0 }
  0xda   :  { %v342_v47 = vadd.f32 %v341_v44, %v268_v43 }
  0xdb   :  { %v3202_v50 = vpop.f32.mrf.mxu1 }
  0xdc   :  { %v416_v52 = vadd.f32 %v415_v41, %v342_v47 }
  0xdd   :  { %v487_v53 = vpop.f32.mrf.mxu1 }
  0xde   :  { %v488_v56 = vadd.f32 %v487_v53, %v416_v52 }
  0xdf   :  { %v3212_v59 = vpop.f32.mrf.mxu1 }
  0xe0   :  { %v3557_v60 = vrot.slane %v488_v56, %v496_v39  ;;  %v507_v7 = vrot.slane %v488_v56, 4 }
  0xe2   :  { %v503_v63 = vmul.f32 %v3557_v60, %v3554_v57 }
  0xe4   :  { %v504_v2 = vadd.f32 %v503_v63, %v23_v35 }
  0xe6   :  { %v505_v6 = vmul.f32 %v504_v2, %v497_v48 }
  0xe8   :  { %v510_v9 = vsel %vm509_vm8, %v505_v6, %v507_v7 }
  0xe9   :  { %v559_v10 = vand.u32 4294901760, %v510_v9 }
  0xeb   :  { %3213 = vmatprep.subr.mxu0 %v559_v10  ;;  %v666_v17 = vsub.f32 %v510_v9, %v559_v10 }
  0xec   :  { %3214 = vmatpush3.msra.mxu0 %v559_v10 }
  0xed   :  { %3216 = vmatmul.mubr.f32.vlgmr.msra.gmra.mxu0 %v608_v11  ;;  %3229 = vmatprep.subr.mxu0 %v666_v17  ;;  %v667_v19 = vand.u32 4294901760, %v666_v17 }
  0xee   :  { %3230 = vmatpush3.msra.mxu0 %v666_v17  ;;  %3218 = vmatprep.mubr.f32.mxu0 %v618_v14 }
  0xef   :  { %3245 = vmatprep.subr.mxu0 %v667_v19  ;;  %v668_v21 = vsub.f32 %v666_v17, %v667_v19 }
  0xf1   :  { %3219 = vmatmul.mubr.f32.gmra.mxu0 %v628_v20  ;;  %v669_v23 = vand.u32 4294901760, %v668_v21 }
  0xf2   :  { %3231 = vmatprep.mubr.f32.mxu0 %v3528_v24  ;;  %v3435_v24 = vmov 0  }
  0xf3   :  { %3221 = vmatprep.subr.mxu1 %v669_v23  ;;  %3420 = vset.pattern.permute.xlu0 %v3435_v24 }
  0xf4   :  { %3222 = vmatpush3.msra.mxu1 %v669_v23  ;;  %1111 = vperm.xlu0 %3420, %v1108_v25  }
  0xf5   :  { %3224 = vmatmul.mubr.f32.vlgmr.msra.gmra.mxu1 %v3546_v46  ;;  %3232 = vmatmul.mubr.f32.vlgmr.msra.gmra.mxu0 %v605_v54 }
  0xf6   :  { %3237 = vmatprep.subr.mxu1 %v559_v10  ;;  %3246 = vmatpush3.msra.mxu0 %v667_v19 }
  0xf7   :  { %3238 = vmatpush3.msra.mxu1 %v559_v10  ;;  %3226 = vmatprep.mubr.f32.mxu1 %v3548_v49 }
  0xf8   :  { %3253 = vmatprep.subr.mxu1 %v559_v10  ;;  %3234 = vmatprep.mubr.f32.mxu0 %v615_v58 }
  0xf9   :  { %3227 = vmatmul.mubr.f32.gmra.mxu1 %v624_v55  ;;  %3235 = vmatmul.mubr.f32.gmra.mxu0 %v625_v62 }
  0xfa   :  { %3239 = vmatprep.mubr.f32.mxu1 %v596_v28  ;;  %3247 = vmatprep.mubr.f32.mxu0 %v3525_v22 }
  0xfb   :  { %3261 = vmatprep.subr.mxu0 %v3433_v1 }
  0xfd   :  { %3240 = vmatmul.mubr.f32.vlgmr.msra.gmra.mxu1 %v606_v61  ;;  %3248 = vmatmul.mubr.f32.vlgmr.msra.gmra.mxu0 %v3546_v46 }
  0xfe   :  { %3254 = vmatpush3.msra.mxu1 %v559_v10  ;;  %3242 = vmatprep.mubr.f32.mxu1 %v616_v0 }
  0xff   :  { %3250 = vmatprep.mubr.f32.mxu0 %v3548_v49  ;;  %3272 = vmatprep.subr.mxu1 %v3433_v1 }
 0x101   :  { %3243 = vmatmul.mubr.f32.gmra.mxu1 %v626_v5  ;;  %3251 = vmatmul.mubr.f32.gmra.mxu0 %v624_v55  ;;  %v1107_v5 = vld [vmem:[%s3762_s4] sm:$0xf] }
 0x102   :  { %3255 = vmatprep.mubr.f32.mxu1 %v3525_v22  ;;  %3269 = vmatprep.mubr.msk.f32.mxu0 %vm3434_vm0, %v3433_v1  ;;  %v1116_v10 = vsel %vm1114_vm9, %v1107_v5, 0 }
 0x103   :  { %v3586_v11 = vand.u32 4294901760, %v1116_v10 }
 0x105   :  { %3256 = vmatmul.mubr.f32.vlgmr.msra.gmra.mxu1 %v3546_v46  ;;  %v3589_v13 = vsub.f32 %v1116_v10, %v3586_v11 }
 0x106   :  { %3258 = vmatprep.mubr.f32.mxu1 %v3548_v49 }
 0x107   :  { %v1189_v20 = vand.u32 4294901760, %v3589_v13 }
 0x109   :  { %3259 = vmatmul.mubr.f32.gmra.mxu1 %v624_v55 }
 0x10a   :  { %3280 = vmatprep.mubr.msk.f32.mxu1 %vm3434_vm0, %v3433_v1 }
 0x1ad   :  { %v3217_v26 = vpop.f32.mrf.mxu0 }
 0x1af   :  { %v600_v22 = vpop.f32.mrf.mxu0 }
 0x1b1   :  { %v3220_v27 = vpop.f32.mrf.mxu0 }
 0x1b3   :  { %v620_v28 = vpop.f32.mrf.mxu0 }
 0x1b5   :  { %v3225_v29 = vpop.f32.mrf.mxu1  ;;  %v3233_v30 = vpop.f32.mrf.mxu0 }
 0x1b6   :  { %v713_v35 = vadd.f32 %v3225_v29, %v3217_v26 }
 0x1b7   :  { %v706_v31 = vpop.f32.mrf.mxu1  ;;  %v798_v32 = vpop.f32.mrf.mxu0 }
 0x1b8   :  { %v707_v38 = vadd.f32 %v706_v31, %v600_v22  ;;  %v806_v41 = vadd.f32 %v3233_v30, %v713_v35  ;;  %v1190_v22 = vsub.f32 %v3589_v13, %v1189_v20 }
 0x1b9   :  { %v3228_v33 = vpop.f32.mrf.mxu1  ;;  %v3236_v34 = vpop.f32.mrf.mxu0 }
 0x1ba   :  { %v725_v42 = vadd.f32 %v3228_v33, %v3220_v27  ;;  %v799_v45 = vadd.f32 %v798_v32, %v707_v38  ;;  %v1191_v33 = vand.u32 4294901760, %v1190_v22 }
 0x1bb   :  { %v718_v36 = vpop.f32.mrf.mxu1  ;;  %v812_v37 = vpop.f32.mrf.mxu0 }
 0x1bc   :  { %v719_v46 = vadd.f32 %v718_v36, %v620_v28  ;;  %v820_v49 = vadd.f32 %v3236_v34, %v725_v42 }
 0x1bd   :  { %v3241_v39 = vpop.f32.mrf.mxu1  ;;  %v3249_v40 = vpop.f32.mrf.mxu0 }
 0x1be   :  { %v902_v47 = vadd.f32 %v3241_v39, %v806_v41  ;;  %v813_v53 = vadd.f32 %v812_v37, %v719_v46 }
 0x1bf   :  { %v893_v43 = vpop.f32.mrf.mxu1  ;;  %v991_v44 = vpop.f32.mrf.mxu0 }
 0x1c0   :  { %v894_v50 = vadd.f32 %v893_v43, %v799_v45  ;;  %v998_v54 = vadd.f32 %v3249_v40, %v902_v47 }
 0x1c1   :  { %v3244_v48 = vpop.f32.mrf.mxu1  ;;  %v3252_v52 = vpop.f32.mrf.mxu0 }
 0x1c2   :  { %v918_v55 = vadd.f32 %v3244_v48, %v820_v49  ;;  %v992_v58 = vadd.f32 %v991_v44, %v894_v50  ;;  %v1606_v44 = vsel %vm1114_vm9, %v3485_v12, 0 }
 0x1c3   :  { %v909_v51 = vpop.f32.mrf.mxu1  ;;  %v1003_v62 = vpop.f32.mrf.mxu0  ;;  %v3666_v45 = vsub.f32 %v1606_v44, %v1606_v44 }
 0x1c4   :  { %v910_v59 = vadd.f32 %v909_v51, %v813_v53  ;;  %v1010_v0 = vadd.f32 %v3252_v52, %v918_v55  ;;  %v1112_v51 = vpop.permute.xlu0 %1111 }
 0x1c5   :  { %v3257_v56 = vpop.f32.mrf.mxu1  ;;  %v3669_v46 = vand.u32 4294901760, %v3666_v45 }
 0x1c6   :  { %v1088_v61 = vadd.f32 %v3257_v56, %v998_v54  ;;  %v1004_v6 = vadd.f32 %v1003_v62, %v910_v59 }
 0x1c7   :  { %v1081_v63 = vpop.f32.mrf.mxu1  ;;  %v1718_v47 = vsub.f32 %v3666_v45, %v3669_v46 }
 0x1c8   :  { %3421 = vtanh.f32 %v1088_v61  ;;  %v1082_v2 = vadd.f32 %v1081_v63, %v992_v58 }
 0x1c9   :  { %v3260_v3 = vpop.f32.mrf.mxu1  ;;  %v3673_v48 = vand.u32 4294901760, %v1718_v47 }
 0x1ca   :  { %3423 = vtanh.f32 %v1082_v2  ;;  %v1100_v7 = vadd.f32 %v3260_v3, %v1010_v0 }
 0x1cb   :  { %v1093_v8 = vpop.f32.mrf.mxu1 }
 0x1cc   :  { %3425 = vtanh.f32 %v1100_v7  ;;  %v1094_v9 = vadd.f32 %v1093_v8, %v1004_v6 }
 0x1ce   :  { %3427 = vtanh.f32 %v1094_v9 }
 0x1d5   :  { %v3422_v14 = vpop.eup %3421 }
 0x1d6   :  { %v3591_v17 = vand.u32 4294901760, %v3422_v14 }
 0x1d7   :  { %v3424_v19 = vpop.eup %3423 }
 0x1d8   :  { %v3594_v21 = vand.u32 4294901760, %v3424_v19  ;;  %v1237_v25 = vsub.f32 %v3422_v14, %v3591_v17 }
 0x1d9   :  { %v3426_v23 = vpop.eup %3425 }
 0x1da   :  { %v3596_v24 = vand.u32 4294901760, %v3426_v23  ;;  %v1244_v29 = vsub.f32 %v3424_v19, %v3594_v21  ;;  %v1238_v32 = vand.u32 4294901760, %v1237_v25 }
 0x1db   :  { %v3428_v26 = vpop.eup %3427 }
 0x1dc   :  { %3262 = vmatpush3.msra.mxu0 %v3596_v24  ;;  %v3603_v27 = vand.u32 4294901760, %v3428_v26  ;;  %v1223_v28 = vsub.f32 %v3426_v23, %v3596_v24  ;;  %v1245_v36 = vand.u32 4294901760, %v1244_v29  ;;  %v1239_v39 = vsub.f32 %v1237_v25, %v1238_v32 }
 0x1dd   :  { %3263 = vmatprep.subr.mxu0 %v3433_v1 }
 0x1de   :  { %3264 = vmatpush3.msra.mxu0 %v3603_v27  ;;  %v1224_v30 = vand.u32 4294901760, %v1223_v28  ;;  %v1230_v31 = vsub.f32 %v3428_v26, %v3603_v27  ;;  %v1246_v41 = vsub.f32 %v1244_v29, %v1245_v36  ;;  %v1240_v42 = vand.u32 4294901760, %v1239_v39 }
 0x1df   :  { %3265 = vmatprep.subr.mxu0 %v3433_v1 }
 0x1e0   :  { %3266 = vmatpush3.msra.mxu0 %v3591_v17  ;;  %v1225_v34 = vsub.f32 %v1223_v28, %v1224_v30  ;;  %v1231_v35 = vand.u32 4294901760, %v1230_v31  ;;  %v1247_v43 = vand.u32 4294901760, %v1246_v41 }
 0x1e1   :  { %3267 = vmatprep.subr.mxu0 %v3433_v1 }
 0x1e2   :  { %3268 = vmatpush3.msra.mxu0 %v3594_v21  ;;  %v1226_v37 = vand.u32 4294901760, %v1225_v34  ;;  %v1232_v38 = vsub.f32 %v1230_v31, %v1231_v35 }
 0x1e3   :  { %3283 = vmatprep.subr.mxu0 %v3433_v1  ;;  %3270 = vmatmul.mubr.f32.vlgmr.msra.gmra.mxu0 %v1191_v33 }
 0x1e4   :  { %3273 = vmatpush3.msra.mxu1 %v1226_v37  ;;  %3284 = vmatpush3.msra.mxu0 %v1223_v28  ;;  %v1233_v40 = vand.u32 4294901760, %v1232_v38 }
 0x1e5   :  { %3274 = vmatprep.subr.mxu1 %v3433_v1  ;;  %3285 = vmatprep.subr.mxu0 %v3433_v1 }
 0x1e6   :  { %3275 = vmatpush3.msra.mxu1 %v1233_v40  ;;  %3286 = vmatpush3.msra.mxu0 %v1230_v31 }
 0x1e7   :  { %3276 = vmatprep.subr.mxu1 %v3433_v1  ;;  %3287 = vmatprep.subr.mxu0 %v3433_v1 }
 0x1e8   :  { %3277 = vmatpush3.msra.mxu1 %v1240_v42  ;;  %3288 = vmatpush3.msra.mxu0 %v1237_v25 }
 0x1e9   :  { %3278 = vmatprep.subr.mxu1 %v3433_v1  ;;  %3289 = vmatprep.subr.mxu0 %v3433_v1 }
 0x1ea   :  { %3279 = vmatpush3.msra.mxu1 %v1247_v43  ;;  %3290 = vmatpush3.msra.mxu0 %v1244_v29 }
 0x1eb   :  { %3291 = vmatprep.mubr.msk.f32.mxu0 %vm3434_vm0, %v3433_v1  ;;  %3294 = vmatprep.subr.mxu1 %v3433_v1 }
 0x1ec   :  { %3305 = vmatprep.subr.mxu0 %v3433_v1  ;;  %3281 = vmatmul.mubr.f32.vlgmr.msra.gmra.mxu1 %v3586_v11 }
 0x1ed   :  { %3292 = vmatmul.mubr.f32.vlgmr.msra.gmra.mxu0 %v3589_v13  ;;  %3295 = vmatpush3.msra.mxu1 %v3596_v24 }
 0x1ee   :  { %3306 = vmatpush3.msra.mxu0 %v1224_v30  ;;  %3296 = vmatprep.subr.mxu1 %v3433_v1 }
 0x1ef   :  { %3307 = vmatprep.subr.mxu0 %v3433_v1  ;;  %3297 = vmatpush3.msra.mxu1 %v3603_v27 }
 0x1f0   :  { %3308 = vmatpush3.msra.mxu0 %v1231_v35  ;;  %3298 = vmatprep.subr.mxu1 %v3433_v1 }
 0x1f1   :  { %3309 = vmatprep.subr.mxu0 %v3433_v1  ;;  %3299 = vmatpush3.msra.mxu1 %v3591_v17 }
 0x1f2   :  { %3310 = vmatpush3.msra.mxu0 %v1238_v32  ;;  %3300 = vmatprep.subr.mxu1 %v3433_v1 }
 0x1f3   :  { %3311 = vmatprep.subr.mxu0 %v3433_v1  ;;  %3301 = vmatpush3.msra.mxu1 %v3594_v21 }
 0x1f4   :  { %3302 = vmatprep.mubr.msk.f32.mxu1 %vm3434_vm0, %v3433_v1  ;;  %3312 = vmatpush3.msra.mxu0 %v1245_v36 }
 0x1f5   :  { %3303 = vmatmul.mubr.f32.vlgmr.msra.gmra.mxu1 %v1189_v20  ;;  %3316 = vmatprep.subr.mxu1 %v3433_v1 }
 0x1f6   :  { %3313 = vmatprep.mubr.msk.f32.mxu0 %vm3434_vm0, %v3433_v1  ;;  %3317 = vmatpush3.msra.mxu1 %v3596_v24 }
 0x1f7   :  { %3314 = vmatmul.mubr.f32.vlgmr.msra.gmra.mxu0 %v3586_v11  ;;  %3318 = vmatprep.subr.mxu1 %v3433_v1 }
 0x1f8   :  { %3319 = vmatpush3.msra.mxu1 %v3603_v27  ;;  %3324 = vmatprep.mubr.msk.f32.mxu1 %vm3434_vm0, %v3433_v1 }
 0x1f9   :  { %3320 = vmatprep.subr.mxu1 %v3433_v1  ;;  %3327 = vmatprep.subr.mxu0 %v3433_v1 }
 0x1fa   :  { %3321 = vmatpush3.msra.mxu1 %v3591_v17  ;;  %3328 = vmatpush3.xpose.msk.msra.mxu0 %vm1114_vm9, %v3485_v12 }
 0x1fb   :  { %3322 = vmatprep.subr.mxu1 %v3433_v1  ;;  %3329 = vmatprep.mubr.msk.f32.mxu0 %vm3434_vm0, %v3433_v1 }
 0x1fc   :  { %3323 = vmatpush3.msra.mxu1 %v3594_v21  ;;  %3337 = vmatprep.subr.mxu0 %v3433_v1 }
 0x1fd   :  { %3325 = vmatmul.mubr.f32.vlgmr.msra.gmra.mxu1 %v3586_v11  ;;  %3332 = vmatprep.subr.mxu1 %v3433_v1 }
 0x1fe   :  { %3334 = vmatprep.mubr.msk.f32.mxu1 %vm3434_vm0, %v3433_v1  ;;  %3333 = vmatpush3.xpose.msra.mxu1 %v3673_v48 }
 0x1ff   :  { %3342 = vmatprep.subr.mxu1 %v3433_v1 }
 0x2a3   :  { %v1193_v49 = vpop.f32.mrf.mxu0 }
 0x2a4   :  { %v1194_v54 = vadd.f32 %v1193_v49, %v1112_v51 }
 0x2a5   :  { %v3271_v50 = vpop.f32.mrf.mxu0 }
 0x2ac   :  { %v1284_v52 = vpop.f32.mrf.mxu1 }
 0x2ad   :  { %v1364_v53 = vpop.f32.mrf.mxu0  ;;  %v1285_v58 = vadd.f32 %v1284_v52, %v1194_v54 }
 0x2ae   :  { %v3282_v55 = vpop.f32.mrf.mxu1 }
 0x2af   :  { %v3293_v56 = vpop.f32.mrf.mxu0  ;;  %v1365_v61 = vadd.f32 %v1364_v53, %v1285_v58 }
 0x2b5   :  { %v1441_v59 = vpop.f32.mrf.mxu1 }
 0x2b6   :  { %v1442_v0 = vadd.f32 %v1441_v59, %v1365_v61  ;;  %v2511_v59 = vsub.s32 2, %v3477_v4 }
 0x2b7   :  { %v1524_v62 = vpop.f32.mrf.mxu0  ;;  %v3304_v63 = vpop.f32.mrf.mxu1 }
 0x2b8   :  { %v1525_v3 = vadd.f32 %v1524_v62, %v1442_v0 }
 0x2b9   :  { %v3315_v2 = vpop.f32.mrf.mxu0 }
 0x2bd   :  { %v1599_v5 = vpop.f32.mrf.mxu1 }
 0x2be   :  { %v3677_v6 = vadd.f32 %v1599_v5, %v1525_v3 }
 0x2bf   :  { %v3326_v7 = vpop.f32.mrf.mxu1 }
 0x2c0   :  { %v1604_v8 = vsel %vm1114_vm9, %v3677_v6, 0  ;;  %v2505_v54 = vmul.f32 %v3677_v6, %v3557_v60 }
 0x2c1   :  { %v1674_v9 = vand.u32 4294901760, %v1604_v8 }
 0x2c2   :  { %v2506_v61 = vadd.f32 %v2505_v54, %v3554_v57 }
 0x2c3   :  { %v1675_v10 = vsub.f32 %v1604_v8, %v1674_v9  ;;  %3335 = vmatmul.mubr.f32.vlgmr.msra.gmra.mxu1 %v1674_v9 }
 0x2c4   :  { %3343 = vmatpush3.xpose.msk.msra.mxu1 %vm1114_vm9, %v3485_v12  ;;  %3344 = vmatprep.mubr.msk.f32.mxu1 %vm3434_vm0, %v3433_v1  ;;  %v2507_v2 = vmul.f32 %v2506_v61, %v2506_v61 }
 0x2c5   :  { %v1676_v11 = vand.u32 4294901760, %v1675_v10  ;;  %3352 = vmatprep.subr.mxu1 %v3433_v1 }
 0x2c7   :  { %3345 = vmatmul.mubr.f32.vlgmr.msra.gmra.mxu1 %v1676_v11  ;;  %v1677_v13 = vsub.f32 %v1675_v10, %v1676_v11 }
 0x2c8   :  { %3353 = vmatpush3.xpose.msk.msra.mxu1 %vm1114_vm9, %v3485_v12  ;;  %3354 = vmatprep.mubr.msk.f32.mxu1 %vm3434_vm0, %v3433_v1 }
 0x2c9   :  { %v1678_v14 = vand.u32 4294901760, %v1677_v13  ;;  %3362 = vmatprep.subr.mxu1 %v3433_v1 }
 0x2cb   :  { %3330 = vmatmul.mubr.f32.vlgmr.msra.gmra.mxu0 %v1678_v14  ;;  %3355 = vmatmul.mubr.f32.vlgmr.msra.gmra.mxu1 %v1674_v9 }
 0x2cc   :  { %3338 = vmatpush3.xpose.msra.mxu0 %v3666_v45  ;;  %3339 = vmatprep.mubr.msk.f32.mxu0 %vm3434_vm0, %v3433_v1 }
 0x2cd   :  { %3347 = vmatprep.subr.mxu0 %v3433_v1  ;;  %3363 = vmatpush3.msra.mxu1 %v3503_v18 }
 0x2ce   :  { %3364 = vmatprep.mubr.msk.f32.mxu1 %vm3434_vm0, %v3433_v1  ;;  %3372 = vmatprep.subr.mxu1 %v3433_v1 }
 0x2cf   :  { %3340 = vmatmul.mubr.f32.vlgmr.msra.gmra.mxu0 %v1675_v10 }
 0x2d0   :  { %3348 = vmatpush3.xpose.msra.mxu0 %v3669_v46  ;;  %3349 = vmatprep.mubr.msk.f32.mxu0 %vm3434_vm0, %v3433_v1 }
 0x2d1   :  { %3357 = vmatprep.subr.mxu0 %v3433_v1 }
 0x2d3   :  { %3350 = vmatmul.mubr.f32.vlgmr.msra.gmra.mxu0 %v1674_v9 }
 0x2d4   :  { %3358 = vmatpush3.msk.msra.mxu0 %vm41_vm4, %v3485_v12  ;;  %3359 = vmatprep.mubr.msk.f32.mxu0 %vm3434_vm0, %v3433_v1 }
 0x2d5   :  { %3367 = vmatprep.subr.mxu0 %v3433_v1 }
 0x383   :  { %v1756_v18 = vpop.f32.mrf.mxu1 }
 0x385   :  { %v3336_v17 = vpop.f32.mrf.mxu1 }
 0x387   :  { %v1904_v19 = vpop.f32.mrf.mxu1 }
 0x389   :  { %v3346_v20 = vpop.f32.mrf.mxu1 }
 0x38b   :  { %v1680_v21 = vpop.f32.mrf.mxu0  ;;  %v2050_v23 = vpop.f32.mrf.mxu1 }
 0x38c   :  { %v1757_v26 = vadd.f32 %v1756_v18, %v1680_v21 }
 0x38d   :  { %v3331_v24 = vpop.f32.mrf.mxu0  ;;  %v3356_v25 = vpop.f32.mrf.mxu1 }
 0x38f   :  { %v1830_v22 = vpop.f32.mrf.mxu0 }
 0x390   :  { %v1831_v27 = vadd.f32 %v1830_v22, %v1757_v26 }
 0x391   :  { %v3341_v28 = vpop.f32.mrf.mxu0 }
 0x392   :  { %v1905_v29 = vadd.f32 %v1904_v19, %v1831_v27 }
 0x393   :  { %v1978_v30 = vpop.f32.mrf.mxu0 }
 0x394   :  { %v1979_v31 = vadd.f32 %v1978_v30, %v1905_v29 }
 0x395   :  { %v3351_v32 = vpop.f32.mrf.mxu0 }
 0x396   :  { %v2051_v33 = vadd.f32 %v2050_v23, %v1979_v31 }
 0x398   :  { %v2054_v34 = vmul.f32 0.0625, %v2051_v33 }
 0x39a   :  { %v2056_v35 = vsel %vm37_vm1, %v2054_v34, 0 }
 0x39b   :  { %v2124_v36 = vand.u32 4294901760, %v2056_v35 }
 0x39d   :  { %v2125_v37 = vsub.f32 %v2056_v35, %v2124_v36  ;;  %3365 = vmatmul.mubr.f32.vlgmr.msra.gmra.mxu1 %v2124_v36 }
 0x39e   :  { %3373 = vmatpush3.msk.msra.mxu1 %vm41_vm4, %v3485_v12  ;;  %3374 = vmatprep.mubr.msk.f32.mxu1 %vm3434_vm0, %v3433_v1 }
 0x39f   :  { %v2126_v38 = vand.u32 4294901760, %v2125_v37  ;;  %3382 = vmatprep.subr.mxu1 %v3433_v1 }
 0x3a1   :  { %3375 = vmatmul.mubr.f32.vlgmr.msra.gmra.mxu1 %v2126_v38  ;;  %v2127_v39 = vsub.f32 %v2125_v37, %v2126_v38 }
 0x3a2   :  { %3383 = vmatpush3.msk.msra.mxu1 %vm41_vm4, %v3485_v12  ;;  %3384 = vmatprep.mubr.msk.f32.mxu1 %vm3434_vm0, %v3433_v1 }
 0x3a3   :  { %v2128_v40 = vand.u32 4294901760, %v2127_v39  ;;  %3392 = vmatprep.subr.mxu1 %v3673_v48 }
 0x3a5   :  { %3360 = vmatmul.mubr.f32.vlgmr.msra.gmra.mxu0 %v2128_v40  ;;  %3385 = vmatmul.mubr.f32.vlgmr.msra.gmra.mxu1 %v2124_v36 }
 0x3a6   :  { %3368 = vmatpush3.msra.mxu0 %v3492_v15  ;;  %3369 = vmatprep.mubr.msk.f32.mxu0 %vm3434_vm0, %v3433_v1 }
 0x3a7   :  { %3377 = vmatprep.subr.mxu0 %v3433_v1  ;;  %3393 = vmatpush3.xpose.msra.mxu1 %v3673_v48 }
 0x3a8   :  { %3402 = vmatprep.subr.msk.mxu1 %vm1114_vm9, %v3485_v12 }
 0x3a9   :  { %3370 = vmatmul.mubr.f32.vlgmr.msra.gmra.mxu0 %v2125_v37  ;;  %v3033_v37 = vsub.s32 6, %v3477_v4 }
 0x3aa   :  { %3378 = vmatpush3.msra.mxu0 %v3495_v16  ;;  %3379 = vmatprep.mubr.msk.f32.mxu0 %vm3434_vm0, %v3433_v1 }
 0x3ab   :  { %3387 = vmatprep.subr.msk.mxu0 %vm1114_vm9, %v3485_v12 }
 0x3ad   :  { %3380 = vmatmul.mubr.f32.vlgmr.msra.gmra.mxu0 %v2124_v36 }
 0x3ae   :  { %3388 = vmatpush3.xpose.msk.msra.mxu0 %vm1114_vm9, %v3485_v12 }
 0x3af   :  { %3397 = vmatprep.subr.mxu0 %v3666_v45 }
 0x45d   :  { %v2206_v15 = vpop.f32.mrf.mxu1 }
 0x45f   :  { %v3366_v41 = vpop.f32.mrf.mxu1 }
 0x461   :  { %v2354_v42 = vpop.f32.mrf.mxu1 }
 0x463   :  { %v3376_v43 = vpop.f32.mrf.mxu1 }
 0x465   :  { %v2130_v44 = vpop.f32.mrf.mxu0  ;;  %v2500_v47 = vpop.f32.mrf.mxu1 }
 0x466   :  { %v2207_v49 = vadd.f32 %v2206_v15, %v2130_v44 }
 0x467   :  { %v3361_v48 = vpop.f32.mrf.mxu0  ;;  %v3386_v16 = vpop.f32.mrf.mxu1 }
 0x469   :  { %v2280_v50 = vpop.f32.mrf.mxu0 }
 0x46a   :  { %v2281_v1 = vadd.f32 %v2280_v50, %v2207_v49 }
 0x46b   :  { %v3371_v51 = vpop.f32.mrf.mxu0 }
 0x46c   :  { %v2355_v52 = vadd.f32 %v2354_v42, %v2281_v1 }
 0x46d   :  { %v2428_v53 = vpop.f32.mrf.mxu0 }
 0x46e   :  { %v2429_v55 = vadd.f32 %v2428_v53, %v2355_v52 }
 0x46f   :  { %v3381_v56 = vpop.f32.mrf.mxu0 }
 0x470   :  { %v2501_v58 = vadd.f32 %v2500_v47, %v2429_v55 }
 0x472   :  { %v2504_v62 = vsub.f32 %v3677_v6, %v2501_v58 }
 0x474   :  { %v2508_v63 = vmul.f32 %v2504_v62, %v2504_v62  ;;  %v2512_v0 = vrot.slane %v2504_v62, %v2511_v59 }
 0x476   :  { %v2513_v3 = vmul.f32 %v2512_v0, %v2504_v62  ;;  %v2515_v5 = vrot.slane %v2508_v63, 4 }
 0x478   :  { %v2517_v7 = vsel %vm509_vm8, %v2507_v2, %v2515_v5  ;;  %v2522_v8 = vsel %vm1114_vm9, %v2513_v3, 0 }
 0x479   :  { %v2519_v60 = vsel %vm1114_vm9, %v2517_v7, 0  ;;  %v2600_v9 = vand.u32 4294901760, %v2522_v8 }
 0x47a   :  { %v2590_v10 = vand.u32 4294901760, %v2519_v60 }
 0x47b   :  { %v2601_v11 = vsub.f32 %v2522_v8, %v2600_v9 }
 0x47c   :  { %3394 = vmatprep.mubr.f32.mxu1 %v2590_v10  ;;  %v2591_v13 = vsub.f32 %v2519_v60, %v2590_v10 }
 0x47d   :  { %3395 = vmatmul.mubr.f32.vlgmr.msra.gmra.mxu1 %v2600_v9  ;;  %v2602_v57 = vand.u32 4294901760, %v2601_v11 }
 0x47e   :  { %3403 = vmatpush3.xpose.msk.msra.mxu1 %vm1114_vm9, %v3485_v12  ;;  %v2592_v6 = vand.u32 4294901760, %v2591_v13 }
 0x47f   :  { %3412 = vmatprep.subr.msk.mxu1 %vm1114_vm9, %v3485_v12  ;;  %v2603_v14 = vsub.f32 %v2601_v11, %v2602_v57 }
 0x480   :  { %3404 = vmatprep.mubr.f32.mxu1 %v2592_v6  ;;  %v2593_v18 = vsub.f32 %v2591_v13, %v2592_v6 }
 0x481   :  { %3405 = vmatmul.mubr.f32.vlgmr.msra.gmra.mxu1 %v2602_v57  ;;  %v2604_v19 = vand.u32 4294901760, %v2603_v14 }
 0x482   :  { %3413 = vmatpush3.xpose.msk.msra.mxu1 %vm1114_vm9, %v3485_v12  ;;  %3414 = vmatprep.mubr.f32.mxu1 %v2590_v10  ;;  %v2594_v17 = vand.u32 4294901760, %v2593_v18 }
 0x484   :  { %3389 = vmatprep.mubr.f32.mxu0 %v2594_v17 }
 0x485   :  { %3390 = vmatmul.mubr.f32.vlgmr.msra.gmra.mxu0 %v2604_v19  ;;  %3415 = vmatmul.mubr.f32.vlgmr.msra.gmra.mxu1 %v2600_v9 }
 0x486   :  { %3398 = vmatpush3.xpose.msra.mxu0 %v3666_v45  ;;  %3399 = vmatprep.mubr.f32.mxu0 %v2591_v13 }
 0x487   :  { %3407 = vmatprep.subr.mxu0 %v3669_v46 }
 0x489   :  { %3400 = vmatmul.mubr.f32.vlgmr.msra.gmra.mxu0 %v2601_v11 }
 0x48a   :  { %3408 = vmatpush3.xpose.msra.mxu0 %v3669_v46  ;;  %3409 = vmatprep.mubr.f32.mxu0 %v2590_v10 }
 0x48d   :  { %3410 = vmatmul.mubr.f32.vlgmr.msra.gmra.mxu0 %v2600_v9 }
 0x53d   :  { %v3396_v20 = vpop.f32.mrf.mxu1 }
 0x53f   :  { %v2682_v21 = vpop.f32.mrf.mxu1 }
 0x541   :  { %v3406_v23 = vpop.f32.mrf.mxu1 }
 0x543   :  { %v2843_v25 = vpop.f32.mrf.mxu1 }
 0x545   :  { %v3391_v12 = vpop.f32.mrf.mxu0  ;;  %v3416_v29 = vpop.f32.mrf.mxu1 }
 0x546   :  { %v2689_v43 = vadd.f32 %v3396_v20, %v3391_v12 }
 0x547   :  { %v2596_v24 = vpop.f32.mrf.mxu0  ;;  %v3003_v33 = vpop.f32.mrf.mxu1 }
 0x548   :  { %v2683_v22 = vadd.f32 %v2682_v21, %v2596_v24 }
 0x549   :  { %v3401_v26 = vpop.f32.mrf.mxu0 }
 0x54a   :  { %v2770_v47 = vadd.f32 %v3401_v26, %v2689_v43 }
 0x54b   :  { %v2762_v27 = vpop.f32.mrf.mxu0 }
 0x54c   :  { %v2763_v28 = vadd.f32 %v2762_v27, %v2683_v22  ;;  %v2852_v50 = vadd.f32 %v3406_v23, %v2770_v47 }
 0x54d   :  { %v3411_v45 = vpop.f32.mrf.mxu0 }
 0x54e   :  { %v2844_v30 = vadd.f32 %v2843_v25, %v2763_v28  ;;  %v2932_v51 = vadd.f32 %v3411_v45, %v2852_v50 }
 0x54f   :  { %v2925_v31 = vpop.f32.mrf.mxu0 }
 0x550   :  { %v2926_v32 = vadd.f32 %v2925_v31, %v2844_v30  ;;  %v3010_v4 = vadd.f32 %v3416_v29, %v2932_v51 }
 0x552   :  { %v3004_v34 = vadd.f32 %v3003_v33, %v2926_v32  ;;  %v3030_v54 = vmul.f32 0.0625, %v3010_v4 }
 0x554   :  { %v3022_v46 = vmul.f32 0.06666667, %v3004_v34  ;;  %v3014_v38 = vsel %vm3013_vm10, %v3004_v34, 0.0 }
 0x555   :  { %v3015_v41 = vrot.slane %v3014_v38, 4 }
 0x556   :  { %3429 = vrsqrt.f32 %v3022_v46  ;;  %vm3025_vm11 = vcmp.eq.f32.partialorder %v3022_v46, inf  ;;  %v3028_v39 = vand.u32 2147483648, %v3022_v46  ;;  %vm3027_vm12 = vcmp.eq.f32.partialorder %v3022_v46, 0.0 }
 0x557   :  { %v3016_v48 = vadd.f32 %v3015_v41, %v3014_v38 }
 0x559   :  { %v3017_v1 = vrot.slane %v3016_v48, 2 }
 0x55b   :  { %v3018_v52 = vadd.f32 %v3017_v1, %v3016_v48 }
 0x55d   :  { %v3019_v53 = vrot.slane %v3018_v52, 1 }
 0x55f   :  { %v3020_v55 = vadd.f32 %v3019_v53, %v3018_v52 }
 0x561   :  { %v3021_v59 = vmul.f32 0.015625, %v3020_v55 }
 0x563   :  { %v3430_v35 = vpop.eup %3429 }
 0x564   :  { %v3024_v36 = vmul.f32 %v3430_v35, %v3022_v46 }
 0x566   :  { %v3026_v40 = vsel %vm3025_vm11, %v3022_v46, %v3024_v36 }
 0x567   :  { %v3029_v15 = vsel %vm3027_vm12, %v3028_v39, %v3026_v40 }
 0x568   :  { %v3034_v42 = vrot.slane %v3029_v15, %v3033_v37 }
 0x56a   :  { %v3035_v44 = vmul.f32 %v3034_v42, %v3029_v15 }
 0x56c   :  { %v3036_v16 = vadd.f32 1e-08, %v3035_v44 }
 0x56e   :  { %v3038_v49 = vrot.slane %v3036_v16, 4 }
 0x570   :  { %3431 = vrcp.f32 %v3038_v49 }
 0x57d   :  { %v3432_v56 = vpop.eup %3431 }
 0x57e   :  { %v3041_v58 = vmul.f32 %v3432_v56, %v3030_v54 }
 0x580   :  { %v3043_v61 = vrot.slane %v3041_v58, 7 }
 0x582   :  { %v3046_v62 = vsel %vm3045_vm13, %v3021_v59, %v3043_v61 }
 0x583   :  { %v3048_v63 = vsel %vm3047_vm14, %v3046_v62, %v3041_v58 }
 0x584   :  { %v3049_v0 = vsel %vm509_vm8, %v3048_v63, 0.0 }
 0x585   :  { %3050 = vst.msk [vmem:[%s3763_s6] sm:$0xff] %vm37_vm1, %v3049_v0 }

</bundles_post_ra>
